<compile_context>
chip_gen: v5e
topology: v5e:2x2
jax: 0.10.0
libtpu: 0.0.40
codegen_flags: <defaults>
</compile_context>

<pallas_src>
import functools

import jax
import jax.numpy as jnp
from jax.experimental import pallas as pl
from jax.experimental.pallas import tpu as pltpu


# ----------------------------------------------------------------------------
# pltpu.roll direction probe (once per process): the rotate convention is not
# part of the documented API surface, and the tap <-> weight pairing depends
# on it.  Runs a tiny kernel on the real backend so it matches the lowering
# actually used by the main kernel.
# ----------------------------------------------------------------------------
@functools.lru_cache(maxsize=1)
def _roll_convention_is_numpy():
    """True if pltpu.roll(x, s) == np.roll(x, s)  (out[i] = in[i - s])."""
    def probe(x_ref, o_ref):
        o_ref[...] = pltpu.roll(x_ref[...], 1, axis=1)

    x = jnp.tile(jax.lax.iota(jnp.float32, 128)[None, :], (8, 1))
    y = pl.pallas_call(
        probe, out_shape=jax.ShapeDtypeStruct((8, 128), jnp.float32))(x)
    # np.roll semantics: out[0] == in[-1] == 127 ; flipped: out[0] == 1.
    return bool(y[0, 0] > 64.0)


# ----------------------------------------------------------------------------
# Kernel: fused main+gate 3x3 conv (taps built in-kernel) + gated epilogue.
# ----------------------------------------------------------------------------
def _make_kernel(h, w, cin, cout, cgate, nb, roll_is_numpy):
    hw = h * w
    ctot = cout + cgate
    offs = [(oy, ox) for oy in (-1, 0, 1) for ox in (-1, 0, 1)]  # k = (oy+1)*3+(ox+1)

    def kernel(x_ref, w_ref, b_ref, o_ref, tap_ref):
        # (y, x) coordinates of every lane of a flattened image (computed once).
        lane = jax.lax.broadcasted_iota(jnp.int32, (1, hw), 1)
        yy = lane // w
        xx = lane - yy * w

        # Per-tap validity masks (boundary handling of the padding=1 conv).
        masks = []
        for oy, ox in offs:
            conds = []
            if oy < 0:
                conds.append(yy >= 1)
            if oy > 0:
                conds.append(yy <= h - 2)
            if ox < 0:
                conds.append(xx >= 1)
            if ox > 0:
                conds.append(xx <= w - 2)
            m = None
            for c in conds:
                m = c if m is None else jnp.logical_and(m, c)
            masks.append(m)                                   # None for centre tap

        w_all = w_ref[...]                                    # (Ctot, 9*Cin) bf16
        bias = b_ref[...]                                     # (Ctot, 1)     f32

        def body(j, carry):
            xa = x_ref[j]                                     # (Cin, H*W) f32
            for k, (oy, ox) in enumerate(offs):
                off = oy * w + ox
                if off == 0:
                    sh = xa
                else:
                    # Want sh[l] = xa[l + off]; wrap-around only lands on lanes
                    # the mask zeroes, so only the rotation direction matters.
                    shift = (-off if roll_is_numpy else off) % hw
                    sh = pltpu.roll(xa, shift, axis=1)
                    sh = jnp.where(masks[k], sh, 0.0)
                tap_ref[k * cin:(k + 1) * cin, :] = sh        # (9*Cin, H*W) scratch

            # Single stacked matmul: bf16 operands, f32 accumulation.
            tap_mat = tap_ref[...].astype(jnp.bfloat16)
            acc = jnp.dot(w_all, tap_mat,
                          preferred_element_type=jnp.float32)  # (Ctot, H*W)
            acc = acc + bias                                   # f32 bias

            main = acc[:cout]                                  # (Cout,  H*W)
            gate = acc[cout:]                                  # (Cgate, H*W)
            elu = jnp.where(main > 0.0,
                            main, jnp.exp(jnp.minimum(main, 0.0)) - 1.0)
            sig = pl.reciprocal(1.0 + jnp.exp(-gate), approx=True)  # EUP slot
            o_ref[j] = (elu * sig).astype(o_ref.dtype)
            return carry

        jax.lax.fori_loop(0, nb, body, 0)

    return kernel


# ----------------------------------------------------------------------------
# Tiling / VMEM-budget choice per TPU generation.
# ----------------------------------------------------------------------------
def _choose_tiling(b, cin, cout, cgate, hw):
    ru8 = lambda v: -(-v // 8) * 8

    try:
        kind = jax.devices()[0].device_kind.lower()
    except Exception:  # pragma: no cover
        kind = ""
    big_vmem = any(t in kind for t in ("v2", "v3", "v4", "v5", "v6"))
    # v5e/v6e: 128 MiB physical VMEM; v7x (or unknown): only 64 MiB per core.
    budget = (96 << 20) if big_vmem else (40 << 20)

    ctot = cout + cgate
    # Double-buffered input/output blocks scale with nb ...
    per_image = 2 * (ru8(cin) + ru8(cout)) * hw * 4
    # ... while the tap scratch, its bf16 copy and the matmul/epilogue
    # temporaries are per-step fixed costs.
    fixed = (ru8(9 * cin) * 4 + ru8(9 * cin) * 2 + 3 * ru8(ctot) * 4) * hw + (1 << 20)

    usable = budget - (4 << 20)
    if usable > fixed + per_image:
        nb = max(1, min(b, (usable - fixed) // per_image))
    else:
        nb = 1
    # v7x: give both TensorCores a grid step, but only when every step still
    # carries enough work to amortize the ~0.35 us per-step overhead.
    if nb >= b and b >= 2 and b * per_image >= (16 << 20):
        nb = -(-b // 2)

    need = fixed + nb * per_image + (4 << 20)
    cap = (100 << 20) if big_vmem else (52 << 20)
    vmem_limit = int(min(max(need, 32 << 20), cap))
    return int(nb), vmem_limit


# ----------------------------------------------------------------------------
# Wrapper: weight packing, tiling choice, pallas_call.
# ----------------------------------------------------------------------------
@functools.partial(jax.jit, static_argnames=("roll_is_numpy",))
def _gate_conv_jit(x, w_main, b_main, w_gate, b_gate, *, roll_is_numpy):
    b, cin, h, w = x.shape
    if w_main.shape[2:] != (3, 3) or w_gate.shape[2:] != (3, 3):
        raise ValueError("kernel implements the GateConv default: 3x3 / padding=1")
    cout, cgate = w_main.shape[0], w_gate.shape[0]
    ctot = cout + cgate
    hw = h * w

    # Packed weights: column (dy*3+dx)*Cin + c  <->  W[:, c, dy, dx]  for the
    # stacked [main; gate] output rows.  Bias stays f32 (added in epilogue).
    wcat = jnp.concatenate([w_main, w_gate], axis=0)                 # (Ctot,Cin,3,3)
    w_packed = jnp.transpose(wcat, (0, 2, 3, 1)).reshape(ctot, 9 * cin)
    w_packed = w_packed.astype(jnp.bfloat16)
    bias = jnp.concatenate([b_main, b_gate], axis=0).reshape(ctot, 1)
    bias = bias.astype(jnp.float32)

    nb, vmem_limit = _choose_tiling(b, cin, cout, cgate, hw)
    grid = (pl.cdiv(b, nb),)
    kernel = _make_kernel(h, w, cin, cout, cgate, nb, roll_is_numpy)

    out = pl.pallas_call(
        kernel,
        out_shape=jax.ShapeDtypeStruct((b, cout, hw), jnp.float32),
        grid=grid,
        in_specs=[
            pl.BlockSpec((nb, cin, hw), lambda i: (i, 0, 0)),
            # Constant index_maps -> fetched once, kept resident across steps.
            pl.BlockSpec((ctot, 9 * cin), lambda i: (0, 0)),
            pl.BlockSpec((ctot, 1), lambda i: (0, 0)),
        ],
        out_specs=pl.BlockSpec((nb, cout, hw), lambda i: (i, 0, 0)),
        scratch_shapes=[pltpu.VMEM((9 * cin, hw), jnp.float32)],
        compiler_params=pltpu.CompilerParams(
            dimension_semantics=("parallel",),
            vmem_limit_bytes=vmem_limit),
    )(x.reshape(b, cin, hw), w_packed, bias)

    return out.reshape(b, cout, h, w)


def gate_conv_forward(x, params):
    """GateConv forward: x (B, Cin, H, W) -> (B, Cout, H, W), f32."""
    return _gate_conv_jit(
        x, params["w_main"], params["b_main"], params["w_gate"],
        params["b_gate"], roll_is_numpy=_roll_convention_is_numpy())


# ----------------------------------------------------------------------------
# Pure-JAX reference of the PyTorch semantics (for verification).
# matmul_dtype=bf16 mirrors the kernel's bf16 MXU operands (f32 accumulate,
# f32 bias).
# ----------------------------------------------------------------------------
def gate_conv_reference(x, params, *, matmul_dtype=jnp.float32):
    b, cin, h, w = x.shape

    def conv3x3(inp, wgt, bias):
        xq = inp.astype(matmul_dtype).astype(jnp.float32)
        wq = wgt.astype(matmul_dtype).astype(jnp.float32)
        xp = jnp.pad(xq, ((0, 0), (0, 0), (1, 1), (1, 1)))
        out = jnp.zeros((b, wgt.shape[0], h, w), jnp.float32)
        for dy in range(3):
            for dx in range(3):
                out = out + jnp.einsum(
                    "oc,bchw->bohw", wq[:, :, dy, dx],
                    xp[:, :, dy:dy + h, dx:dx + w])
        return out + bias.astype(jnp.float32)[None, :, None, None]

    m = conv3x3(x, params["w_main"], params["b_main"])
    g = conv3x3(x, params["w_gate"], params["b_gate"])
    return jnp.where(m > 0, m, jnp.expm1(m)) * jax.nn.sigmoid(g)


# ----------------------------------------------------------------------------
# Deterministic parameter init + driver.
# ----------------------------------------------------------------------------
def init_params(key, in_channels, out_channels, *, single_gate=True):
    cg = 1 if single_gate else out_channels
    ks = jax.random.split(key, 4)
    n = lambda k, shp, s=0.1: (s * jax.random.normal(k, shp)).astype(jnp.float32)
    return {
        "w_main": n(ks[0], (out_channels, in_channels, 3, 3)),
        "b_main": n(ks[1], (out_channels,)),
        "w_gate": n(ks[2], (cg, in_channels, 3, 3)),
        "b_gate": n(ks[3], (cg,)),
    }


if __name__ == "__main__":
    B, Cin, H, W = 2, 4, 16, 16
    Cout = 4

    key = jax.random.PRNGKey(0)
    kx, kp = jax.random.split(key)
    x = jax.random.normal(kx, (B, Cin, H, W), dtype=jnp.float32)
    params = init_params(kp, Cin, Cout)

    out = gate_conv_forward(x, params)
    out = jax.block_until_ready(out)
    assert out.shape == (B, Cout, H, W), out.shape

    # Check vs. a reference that uses the same bf16 matmul operands.
    ref_bf16 = gate_conv_reference(x, params, matmul_dtype=jnp.bfloat16)
    assert jnp.allclose(out, ref_bf16, atol=2e-2, rtol=2e-2), \
        float(jnp.max(jnp.abs(out - ref_bf16)))

    # Looser sanity check vs. the exact f32 PyTorch semantics.
    ref_f32 = gate_conv_reference(x, params)
    assert jnp.allclose(out, ref_f32, atol=5e-2, rtol=5e-2), \
        float(jnp.max(jnp.abs(out - ref_f32)))

    print("KERNEL_OK")
</pallas_src>

<mosaic_0001>
module attributes {stable_mosaic.version = 11 : i64} {
  func.func @probe(%arg0: memref<8x128xf32, #tpu.memory_space<vmem>>, %arg1: memref<8x128xf32, #tpu.memory_space<vmem>>) attributes {dimension_semantics = [], scalar_prefetch = 0 : i64, scratch_operands = 0 : i64, tpu.core_type = #tpu.core_type<tc>} {
    %c0 = arith.constant 0 : index
    %c0_0 = arith.constant 0 : index
    %0 = vector.load %arg0[%c0, %c0_0] : memref<8x128xf32, #tpu.memory_space<vmem>>, vector<8x128xf32>
    %c1_i32 = arith.constant 1 : i32
    %1 = tpu.dynamic_rotate %0 by %c1_i32 dim 1 : vector<8x128xf32>, i32 -> vector<8x128xf32>
    %c0_1 = arith.constant 0 : index
    %c0_2 = arith.constant 0 : index
    %2 = vector.load %arg1[%c0_1, %c0_2] : memref<8x128xf32, #tpu.memory_space<vmem>>, vector<8x128xf32>
    tpu.vector_store %arg1[%c0_1, %c0_2], %1 {strides = array<i32>} : memref<8x128xf32, #tpu.memory_space<vmem>>, vector<8x128xf32>,
    return
  }
}

</mosaic_0001>

<bundles_post_ra>
// kernel: tpu_custom_call.1
= control target key start
LH: loop header
LB: loop body
LE: loop exit
PB: predicated region body
PF: predicated region fallthrough
CT: control target
= control target key end

     0   :  { %6 = vsyncpa [#allocation3], 0  ;;  %s118_s0 = inlined_call_operand.hbm [shape: f32[8,128], index: 0, kind: input, shape index: {}]   ;;  %s119_s1 = inlined_call_operand.hbm [shape: f32[8,128], index: 1, kind: output, shape index: {}]  }
   0x1   :  { %7 = vsyncpa [#allocation4], 0  ;;  %s13_s8 = sshll.u32 %s118_s0, 4  ;;  %s99_s9 = smov [#allocation2]   ;;  %s14_s8 = int_to_ptr.hbm [resolvable:$true] %s13_s8 }
   0x2   :  { %s15_s10 = sshll.u32 %s99_s9, 4  ;;  %s16_s10 = int_to_ptr.vmem [resolvable:$true] %s15_s10 }
   0x3   :  { %18 = dma.hbm_to_vmem [thread:$0]  %s14_s8, 128, %s16_s10, [#allocation3]  }
   0x4   :  { %95 = dma.done.wait [#allocation3], 128  }
   0x5   :  { %96 = vsyncadd [#allocation3], 4294967168  ;;  %v23_v0 = vld [vmem:[#allocation2] sm:$0xff]  ;;  %s100_s11 = smov 1   ;;  %s101_s12 = smov [#allocation5]  }
   0x6   :  { %24 = vrot.lane.b32.xlu0 %v23_v0, %s100_s11  ;;  %s32_s13 = sshll.u32 %s101_s12, 4  ;;  %s34_s16 = sshll.u32 %s119_s1, 4  ;;  %s33_s13 = int_to_ptr.vmem [resolvable:$true] %s32_s13  ;;  %s35_s16 = int_to_ptr.hbm [resolvable:$true] %s34_s16 }
  0x78   :  { %v25_v1 = vpop.permute.xlu0 %24 }
  0x79   :  { %26 = vst [vmem:[#allocation5] sm:$0xff] %v25_v1 }
  0x7a   :  { %37 = dma.vmem_to_hbm [thread:$0]  %s33_s13, 128, %s35_s16, [#allocation4]  }
  0x7b   :  { %97 = dma.done.wait [#allocation4], 128  }
  0x7c   :  { %98 = vsyncadd [#allocation4], 4294967168 }
  0x7d   :  { %42 = vsyncpa [#allocation3], 1 }
  0x7e   :  { %43 = vsyncpa [#allocation4], 1 }

</bundles_post_ra>
